<compile_context>
chip_gen: v5e
topology: v5e:2x2
jax: 0.10.0
libtpu: 0.0.40
codegen_flags: <defaults>
</compile_context>

<pallas_src>
import functools

import jax
import jax.numpy as jnp
import numpy as np
from jax.experimental import pallas as pl
from jax.experimental.pallas import tpu as pltpu


def fused_add_relu_conv_bn_kernel(a_ref, b_ref, w_ref, gamma_ref, beta_ref,
                                  o_ref, acc_ref, *, eps, k_chunk, use_bf16):
    n_batch, c_in, m = a_ref.shape
    n_chunks = c_in // k_chunk
    mxu_dtype = jnp.bfloat16 if use_bf16 else jnp.float32

    # ---- Pass 1: 1x1 conv == (C_out, C_in) @ (C_in, M), K-chunked.
    # Static (fully unrolled) chunk loop: k_chunk = 128 keeps the weight slice
    # lane-group aligned and the relu(a+b) intermediate small; accumulating
    # through acc_ref serializes chunk live ranges.
    for n in range(n_batch):
        acc_ref[...] = jnp.zeros_like(acc_ref)
        for c in range(n_chunks):
            k0 = c * k_chunk
            xk = jnp.maximum(a_ref[n, k0:k0 + k_chunk, :]
                             + b_ref[n, k0:k0 + k_chunk, :], 0.0)
            wk = w_ref[:, k0:k0 + k_chunk]
            acc_ref[...] += jnp.dot(wk.astype(mxu_dtype), xk.astype(mxu_dtype),
                                    preferred_element_type=jnp.float32)
        # Park pre-BN y for this batch element in the VMEM-resident output.
        o_ref[n] = acc_ref[...]

    # ---- Pass 2: BatchNorm training-mode batch statistics over N*H*W.
    # Two-pass (mean, then E[(y-mean)^2]) to avoid E[y^2]-E[y]^2 cancellation.
    # Note: lane-axis reductions are XLU work; negligible at these sizes.
    count = n_batch * m
    ch_sum = jnp.zeros(gamma_ref.shape, jnp.float32)          # (C_out, 1)
    for n in range(n_batch):
        ch_sum = ch_sum + jnp.sum(o_ref[n], axis=1, keepdims=True)
    mean = ch_sum * (1.0 / count)

    ch_ssq = jnp.zeros(gamma_ref.shape, jnp.float32)
    for n in range(n_batch):
        ch_ssq = ch_ssq + jnp.sum(jnp.square(o_ref[n] - mean), axis=1,
                                  keepdims=True)
    var = ch_ssq * (1.0 / count)                               # biased var

    inv_std = jax.lax.rsqrt(var + eps)                         # EUP rsqrt
    scale = inv_std * gamma_ref[...]                           # (C_out, 1)
    shift = beta_ref[...] - mean * scale                       # (C_out, 1)

    # ---- Pass 3: single fused multiply-add epilogue, lane-dense stores.
    for n in range(n_batch):
        o_ref[n] = (o_ref[n] * scale + shift).astype(o_ref.dtype)


def add_relu_conv_bn(x24, x16, conv_w, gamma, beta, eps=1e-5, *,
                     k_chunk=128, use_bf16=True):
    """x24, x16: (N, C_in, H, W) f32 NCHW. conv_w: (C_out, C_in, 1, 1)."""
    N, C_in, H, W = x24.shape
    C_out = conv_w.shape[0]
    M = H * W

    # Keep the chunk lane-group aligned; fall back to a single chunk if the
    # channel count does not divide evenly.
    if C_in % k_chunk != 0:
        k_chunk = C_in

    # Zero-copy reshapes — no wrapper-side transposes for any N.
    a = x24.reshape(N, C_in, M)
    b = x16.reshape(N, C_in, M)
    w2 = conv_w.reshape(C_out, C_in)
    g2 = gamma.reshape(C_out, 1)
    b2 = beta.reshape(C_out, 1)

    out = pl.pallas_call(
        functools.partial(fused_add_relu_conv_bn_kernel, eps=eps,
                          k_chunk=k_chunk, use_bf16=use_bf16),
        out_shape=jax.ShapeDtypeStruct((N, C_out, M), jnp.float32),
        grid=(1,),
        in_specs=[
            pl.BlockSpec((N, C_in, M), lambda i: (0, 0, 0)),
            pl.BlockSpec((N, C_in, M), lambda i: (0, 0, 0)),
            pl.BlockSpec((C_out, C_in), lambda i: (0, 0)),
            pl.BlockSpec((C_out, 1), lambda i: (0, 0)),
            pl.BlockSpec((C_out, 1), lambda i: (0, 0)),
        ],
        out_specs=pl.BlockSpec((N, C_out, M), lambda i: (0, 0, 0)),
        scratch_shapes=[pltpu.VMEM((C_out, M), jnp.float32)],
        compiler_params=pltpu.CompilerParams(
            dimension_semantics=("arbitrary",)),
    )(a, b, w2, g2, b2)

    return out.reshape(N, C_out, H, W)


def reference(x24, x16, conv_w, gamma, beta, eps=1e-5):
    """Pure-JAX reference of the PyTorch forward (training-mode BN)."""
    x = jnp.maximum(x24 + x16, 0.0)                            # add + relu
    y = jnp.einsum('nchw,oc->nohw', x, conv_w.reshape(conv_w.shape[0], -1))
    mean = y.mean(axis=(0, 2, 3), keepdims=True)
    var = y.var(axis=(0, 2, 3), keepdims=True)                 # biased
    yhat = (y - mean) / jnp.sqrt(var + eps)
    return yhat * gamma.reshape(1, -1, 1, 1) + beta.reshape(1, -1, 1, 1)


if __name__ == "__main__":
    key = jax.random.PRNGKey(0)
    k1, k2, k3, k4, k5 = jax.random.split(key, 5)

    # Channel sizes fixed by the module (256 -> 64); small spatial extent.
    N, C_in, H, W = 1, 256, 16, 16
    C_out = 64

    x24 = jax.random.normal(k1, (N, C_in, H, W), jnp.float32)
    x16 = jax.random.normal(k2, (N, C_in, H, W), jnp.float32)
    conv_w = jax.random.normal(k3, (C_out, C_in, 1, 1), jnp.float32) * 0.05
    gamma = jax.random.normal(k4, (C_out,), jnp.float32) * 0.1 + 1.0
    beta = jax.random.normal(k5, (C_out,), jnp.float32) * 0.1

    use_bf16 = True
    out = add_relu_conv_bn(x24, x16, conv_w, gamma, beta, use_bf16=use_bf16)
    out = jax.block_until_ready(out)

    ref = reference(x24, x16, conv_w, gamma, beta)
    # bf16 MXU operands with f32 accumulation -> bf16-grade tolerance; the
    # f32-operand path (use_bf16=False) holds 2e-3.
    tol = 1e-2 if use_bf16 else 2e-3
    np.testing.assert_allclose(np.asarray(out), np.asarray(ref),
                               rtol=tol, atol=tol)

    print("KERNEL_OK")
</pallas_src>

<mosaic_0001>
module attributes {stable_mosaic.version = 11 : i64} {
  func.func @fused_add_relu_conv_bn_kernel(%arg0: i32, %arg1: memref<1x256x256xf32, #tpu.memory_space<vmem>>, %arg2: memref<1x256x256xf32, #tpu.memory_space<vmem>>, %arg3: memref<64x256xf32, #tpu.memory_space<vmem>>, %arg4: memref<64x1xf32, #tpu.memory_space<vmem>>, %arg5: memref<64x1xf32, #tpu.memory_space<vmem>>, %arg6: memref<1x64x256xf32, #tpu.memory_space<vmem>>, %arg7: memref<64x256xf32, #tpu.memory_space<vmem>>) attributes {dimension_semantics = [#tpu.dimension_semantics<arbitrary>], iteration_bounds = array<i64: 1>, scalar_prefetch = 0 : i64, scratch_operands = 1 : i64, tpu.core_type = #tpu.core_type<tc>, window_params = [{pipeline_mode = #tpu.pipeline_mode<synchronous>, transform_indices = @transform_0, window_bounds = array<i64: 1, 256, 256>}, {pipeline_mode = #tpu.pipeline_mode<synchronous>, transform_indices = @transform_1, window_bounds = array<i64: 1, 256, 256>}, {pipeline_mode = #tpu.pipeline_mode<synchronous>, transform_indices = @transform_2, window_bounds = array<i64: 64, 256>}, {pipeline_mode = #tpu.pipeline_mode<synchronous>, transform_indices = @transform_3, window_bounds = array<i64: 64, 1>}, {pipeline_mode = #tpu.pipeline_mode<synchronous>, transform_indices = @transform_4, window_bounds = array<i64: 64, 1>}, {pipeline_mode = #tpu.pipeline_mode<synchronous>, transform_indices = @transform_5, window_bounds = array<i64: 1, 64, 256>}]} {
    %cst = arith.constant 0.000000e+00 : f32
    %0 = vector.broadcast %cst : f32 to vector<64x256xf32>
    %c0 = arith.constant 0 : index
    %c0_0 = arith.constant 0 : index
    %1 = vector.load %arg7[%c0, %c0_0] : memref<64x256xf32, #tpu.memory_space<vmem>>, vector<64x256xf32>
    tpu.vector_store %arg7[%c0, %c0_0], %0 {strides = array<i32>} : memref<64x256xf32, #tpu.memory_space<vmem>>, vector<64x256xf32>,
    %c0_1 = arith.constant 0 : index
    %c0_2 = arith.constant 0 : index
    %c0_3 = arith.constant 0 : index
    %2 = vector.load %arg1[%c0_1, %c0_2, %c0_3] : memref<1x256x256xf32, #tpu.memory_space<vmem>>, vector<1x128x256xf32>
    %3 = vector.shape_cast %2 : vector<1x128x256xf32> to vector<128x256xf32>
    %c0_4 = arith.constant 0 : index
    %c0_5 = arith.constant 0 : index
    %c0_6 = arith.constant 0 : index
    %4 = vector.load %arg2[%c0_4, %c0_5, %c0_6] : memref<1x256x256xf32, #tpu.memory_space<vmem>>, vector<1x128x256xf32>
    %5 = vector.shape_cast %4 : vector<1x128x256xf32> to vector<128x256xf32>
    %6 = arith.addf %3, %5 : vector<128x256xf32>
    %cst_7 = arith.constant 0.000000e+00 : f32
    %7 = vector.broadcast %cst_7 : f32 to vector<128x256xf32>
    %8 = arith.maximumf %6, %7 : vector<128x256xf32>
    %c0_8 = arith.constant 0 : index
    %c0_9 = arith.constant 0 : index
    %9 = vector.load %arg3[%c0_8, %c0_9] : memref<64x256xf32, #tpu.memory_space<vmem>>, vector<64x128xf32>
    %c0_10 = arith.constant 0 : index
    %c0_11 = arith.constant 0 : index
    %10 = vector.load %arg7[%c0_10, %c0_11] : memref<64x256xf32, #tpu.memory_space<vmem>>, vector<64x256xf32>
    %11 = arith.truncf %9 : vector<64x128xf32> to vector<64x128xbf16>
    %12 = arith.truncf %8 : vector<128x256xf32> to vector<128x256xbf16>
    %cst_12 = arith.constant dense<0.000000e+00> : vector<64x256xf32>
    %13 = tpu.matmul %11, %12, %cst_12 {dimension_numbers = #tpu.dot_dimension_numbers<[1], [0], [0], [1], [0, 0, 1, 1], [], []>} : vector<64x128xbf16>, vector<128x256xbf16>, vector<64x256xf32> -> vector<64x256xf32>
    %14 = arith.addf %10, %13 : vector<64x256xf32>
    %c0_13 = arith.constant 0 : index
    %c0_14 = arith.constant 0 : index
    %15 = vector.load %arg7[%c0_13, %c0_14] : memref<64x256xf32, #tpu.memory_space<vmem>>, vector<64x256xf32>
    tpu.vector_store %arg7[%c0_13, %c0_14], %14 {strides = array<i32>} : memref<64x256xf32, #tpu.memory_space<vmem>>, vector<64x256xf32>,
    %c0_15 = arith.constant 0 : index
    %c128 = arith.constant 128 : index
    %c0_16 = arith.constant 0 : index
    %16 = vector.load %arg1[%c0_15, %c128, %c0_16] : memref<1x256x256xf32, #tpu.memory_space<vmem>>, vector<1x128x256xf32>
    %17 = vector.shape_cast %16 : vector<1x128x256xf32> to vector<128x256xf32>
    %c0_17 = arith.constant 0 : index
    %c128_18 = arith.constant 128 : index
    %c0_19 = arith.constant 0 : index
    %18 = vector.load %arg2[%c0_17, %c128_18, %c0_19] : memref<1x256x256xf32, #tpu.memory_space<vmem>>, vector<1x128x256xf32>
    %19 = vector.shape_cast %18 : vector<1x128x256xf32> to vector<128x256xf32>
    %20 = arith.addf %17, %19 : vector<128x256xf32>
    %cst_20 = arith.constant 0.000000e+00 : f32
    %21 = vector.broadcast %cst_20 : f32 to vector<128x256xf32>
    %22 = arith.maximumf %20, %21 : vector<128x256xf32>
    %c0_21 = arith.constant 0 : index
    %c128_22 = arith.constant 128 : index
    %23 = vector.load %arg3[%c0_21, %c128_22] : memref<64x256xf32, #tpu.memory_space<vmem>>, vector<64x128xf32>
    %c0_23 = arith.constant 0 : index
    %c0_24 = arith.constant 0 : index
    %24 = vector.load %arg7[%c0_23, %c0_24] : memref<64x256xf32, #tpu.memory_space<vmem>>, vector<64x256xf32>
    %25 = arith.truncf %23 : vector<64x128xf32> to vector<64x128xbf16>
    %26 = arith.truncf %22 : vector<128x256xf32> to vector<128x256xbf16>
    %cst_25 = arith.constant dense<0.000000e+00> : vector<64x256xf32>
    %27 = tpu.matmul %25, %26, %cst_25 {dimension_numbers = #tpu.dot_dimension_numbers<[1], [0], [0], [1], [0, 0, 1, 1], [], []>} : vector<64x128xbf16>, vector<128x256xbf16>, vector<64x256xf32> -> vector<64x256xf32>
    %28 = arith.addf %24, %27 : vector<64x256xf32>
    %c0_26 = arith.constant 0 : index
    %c0_27 = arith.constant 0 : index
    %29 = vector.load %arg7[%c0_26, %c0_27] : memref<64x256xf32, #tpu.memory_space<vmem>>, vector<64x256xf32>
    tpu.vector_store %arg7[%c0_26, %c0_27], %28 {strides = array<i32>} : memref<64x256xf32, #tpu.memory_space<vmem>>, vector<64x256xf32>,
    %c0_28 = arith.constant 0 : index
    %c0_29 = arith.constant 0 : index
    %30 = vector.load %arg7[%c0_28, %c0_29] : memref<64x256xf32, #tpu.memory_space<vmem>>, vector<64x256xf32>
    %c0_30 = arith.constant 0 : index
    %c0_31 = arith.constant 0 : index
    %c0_32 = arith.constant 0 : index
    %31 = vector.load %arg6[%c0_30, %c0_31, %c0_32] : memref<1x64x256xf32, #tpu.memory_space<vmem>>, vector<1x64x256xf32>
    %32 = vector.shape_cast %31 : vector<1x64x256xf32> to vector<64x256xf32>
    %33 = vector.shape_cast %30 : vector<64x256xf32> to vector<1x64x256xf32>
    tpu.vector_store %arg6[%c0_30, %c0_31, %c0_32], %33 {strides = array<i32>} : memref<1x64x256xf32, #tpu.memory_space<vmem>>, vector<1x64x256xf32>,
    %cst_33 = arith.constant 0.000000e+00 : f32
    %34 = vector.broadcast %cst_33 : f32 to vector<64x1xf32>
    %c0_34 = arith.constant 0 : index
    %c0_35 = arith.constant 0 : index
    %c0_36 = arith.constant 0 : index
    %35 = vector.load %arg6[%c0_34, %c0_35, %c0_36] : memref<1x64x256xf32, #tpu.memory_space<vmem>>, vector<1x64x256xf32>
    %36 = vector.shape_cast %35 : vector<1x64x256xf32> to vector<64x256xf32>
    %cst_37 = arith.constant dense<0.000000e+00> : vector<64xf32>
    %37 = vector.multi_reduction <add>, %36, %cst_37 [1] : vector<64x256xf32> to vector<64xf32>
    %38 = vector.shape_cast %37 : vector<64xf32> to vector<64x1xf32>
    %39 = arith.addf %34, %38 : vector<64x1xf32>
    %cst_38 = arith.constant 3.906250e-03 : f32
    %40 = vector.broadcast %cst_38 : f32 to vector<64x1xf32>
    %41 = arith.mulf %39, %40 : vector<64x1xf32>
    %cst_39 = arith.constant 0.000000e+00 : f32
    %42 = vector.broadcast %cst_39 : f32 to vector<64x1xf32>
    %c0_40 = arith.constant 0 : index
    %c0_41 = arith.constant 0 : index
    %c0_42 = arith.constant 0 : index
    %43 = vector.load %arg6[%c0_40, %c0_41, %c0_42] : memref<1x64x256xf32, #tpu.memory_space<vmem>>, vector<1x64x256xf32>
    %44 = vector.shape_cast %43 : vector<1x64x256xf32> to vector<64x256xf32>
    %45 = vector.broadcast %41 : vector<64x1xf32> to vector<64x256xf32>
    %46 = arith.subf %44, %45 : vector<64x256xf32>
    %47 = arith.mulf %46, %46 : vector<64x256xf32>
    %cst_43 = arith.constant dense<0.000000e+00> : vector<64xf32>
    %48 = vector.multi_reduction <add>, %47, %cst_43 [1] : vector<64x256xf32> to vector<64xf32>
    %49 = vector.shape_cast %48 : vector<64xf32> to vector<64x1xf32>
    %50 = arith.addf %42, %49 : vector<64x1xf32>
    %cst_44 = arith.constant 3.906250e-03 : f32
    %51 = vector.broadcast %cst_44 : f32 to vector<64x1xf32>
    %52 = arith.mulf %50, %51 : vector<64x1xf32>
    %cst_45 = arith.constant 9.99999974E-6 : f32
    %53 = vector.broadcast %cst_45 : f32 to vector<64x1xf32>
    %54 = arith.addf %52, %53 : vector<64x1xf32>
    %55 = math.rsqrt %54 : vector<64x1xf32>
    %c0_46 = arith.constant 0 : index
    %c0_47 = arith.constant 0 : index
    %56 = vector.load %arg4[%c0_46, %c0_47] : memref<64x1xf32, #tpu.memory_space<vmem>>, vector<64x1xf32>
    %57 = arith.mulf %55, %56 : vector<64x1xf32>
    %c0_48 = arith.constant 0 : index
    %c0_49 = arith.constant 0 : index
    %58 = vector.load %arg5[%c0_48, %c0_49] : memref<64x1xf32, #tpu.memory_space<vmem>>, vector<64x1xf32>
    %59 = arith.mulf %41, %57 : vector<64x1xf32>
    %60 = arith.subf %58, %59 : vector<64x1xf32>
    %c0_50 = arith.constant 0 : index
    %c0_51 = arith.constant 0 : index
    %c0_52 = arith.constant 0 : index
    %61 = vector.load %arg6[%c0_50, %c0_51, %c0_52] : memref<1x64x256xf32, #tpu.memory_space<vmem>>, vector<1x64x256xf32>
    %62 = vector.shape_cast %61 : vector<1x64x256xf32> to vector<64x256xf32>
    %63 = vector.broadcast %57 : vector<64x1xf32> to vector<64x256xf32>
    %64 = arith.mulf %62, %63 : vector<64x256xf32>
    %65 = vector.broadcast %60 : vector<64x1xf32> to vector<64x256xf32>
    %66 = arith.addf %64, %65 : vector<64x256xf32>
    %c0_53 = arith.constant 0 : index
    %c0_54 = arith.constant 0 : index
    %c0_55 = arith.constant 0 : index
    %67 = vector.load %arg6[%c0_53, %c0_54, %c0_55] : memref<1x64x256xf32, #tpu.memory_space<vmem>>, vector<1x64x256xf32>
    %68 = vector.shape_cast %67 : vector<1x64x256xf32> to vector<64x256xf32>
    %69 = vector.shape_cast %66 : vector<64x256xf32> to vector<1x64x256xf32>
    tpu.vector_store %arg6[%c0_53, %c0_54, %c0_55], %69 {strides = array<i32>} : memref<1x64x256xf32, #tpu.memory_space<vmem>>, vector<1x64x256xf32>,
    return
  }
  func.func @transform_0(%arg0: i32) -> (i32, i32, i32) {
    %c0_i32 = arith.constant 0 : i32
    %c0_i32_0 = arith.constant 0 : i32
    %c0_i32_1 = arith.constant 0 : i32
    %c0_i32_2 = arith.constant 0 : i32
    return %c0_i32, %c0_i32_0, %c0_i32_1 : i32, i32, i32
  }
  func.func @transform_1(%arg0: i32) -> (i32, i32, i32) {
    %c0_i32 = arith.constant 0 : i32
    %c0_i32_0 = arith.constant 0 : i32
    %c0_i32_1 = arith.constant 0 : i32
    %c0_i32_2 = arith.constant 0 : i32
    return %c0_i32, %c0_i32_0, %c0_i32_1 : i32, i32, i32
  }
  func.func @transform_2(%arg0: i32) -> (i32, i32) {
    %c0_i32 = arith.constant 0 : i32
    %c0_i32_0 = arith.constant 0 : i32
    %c0_i32_1 = arith.constant 0 : i32
    return %c0_i32, %c0_i32_0 : i32, i32
  }
  func.func @transform_3(%arg0: i32) -> (i32, i32) {
    %c0_i32 = arith.constant 0 : i32
    %c0_i32_0 = arith.constant 0 : i32
    %c0_i32_1 = arith.constant 0 : i32
    return %c0_i32, %c0_i32_0 : i32, i32
  }
  func.func @transform_4(%arg0: i32) -> (i32, i32) {
    %c0_i32 = arith.constant 0 : i32
    %c0_i32_0 = arith.constant 0 : i32
    %c0_i32_1 = arith.constant 0 : i32
    return %c0_i32, %c0_i32_0 : i32, i32
  }
  func.func @transform_5(%arg0: i32) -> (i32, i32, i32) {
    %c0_i32 = arith.constant 0 : i32
    %c0_i32_0 = arith.constant 0 : i32
    %c0_i32_1 = arith.constant 0 : i32
    %c0_i32_2 = arith.constant 0 : i32
    return %c0_i32, %c0_i32_0, %c0_i32_1 : i32, i32, i32
  }
}

</mosaic_0001>

<bundles_post_ra>
// kernel: tpu_custom_call.1
= control target key start
LH: loop header
LB: loop body
LE: loop exit
PB: predicated region body
PF: predicated region fallthrough
CT: control target
= control target key end

     0   :  { %10 = vsyncpa [#allocation4], 0  ;;  %s1402_s0 = inlined_call_operand.hbm [shape: f32[1,256,256], index: 0, kind: input, shape index: {}]   ;;  %s1403_s1 = inlined_call_operand.hbm [shape: f32[1,256,256], index: 1, kind: input, shape index: {}]   ;;  %s1404_s2 = inlined_call_operand.vmem [shape: f32[64,256], index: 2, kind: input, shape index: {}]   ;;  %s1405_s3 = inlined_call_operand.vmem [shape: f32[64,1], index: 3, kind: input, shape index: {}]   ;;  %s1406_s4 = inlined_call_operand.vmem [shape: f32[64,1], index: 4, kind: input, shape index: {}]   ;;  %s1407_s5 = inlined_call_operand.hbm [shape: f32[1,64,256], index: 5, kind: output, shape index: {}]  }
   0x1   :  { %11 = vsyncpa [#allocation7], 0 }
   0x2   :  { %12 = vsyncpa [#allocation5], 0  ;;  %s17_s20 = sshll.u32 %s1402_s0, 4  ;;  %s1132_s21 = smov [#allocation3]   ;;  %s18_s20 = int_to_ptr.hbm [resolvable:$true] %s17_s20 }
   0x3   :  { %s19_s22 = sshll.u32 %s1132_s21, 4  ;;  %s30_s25 = sshll.u32 %s1403_s1, 4  ;;  %s20_s22 = int_to_ptr.vmem [resolvable:$true] %s19_s22  ;;  %s31_s25 = int_to_ptr.hbm [resolvable:$true] %s30_s25 }
   0x4   :  { %s1133_s26 = smov 256   ;;  %s1134_s27 = smov 16  }
   0x5   :  { %25 = dma.hbm_to_vmem [thread:$0]  %s18_s20, 8192, %s20_s22, [#allocation4], %s1133_s26, %s1133_s26, %s1134_s27  }
   0x6   :  { %s1135_s28 = smov [#allocation6]  }
   0x7   :  { %s32_s29 = sshll.u32 %s1135_s28, 4  ;;  %s33_s29 = int_to_ptr.vmem [resolvable:$true] %s32_s29 }
   0x8   :  { %38 = dma.hbm_to_vmem [thread:$0]  %s31_s25, 8192, %s33_s29, [#allocation7], %s1133_s26, %s1133_s26, %s1134_s27  }
   0x9   :  { %1126 = dma.done.wait [#allocation4], 8192  }
   0xa   :  { %1127 = vsyncadd [#allocation4], 4294959104 }
   0xb   :  { %1128 = dma.done.wait [#allocation7], 8192  }
   0xc   :  { %1129 = vsyncadd [#allocation7], 4294959104  ;;  %v97_v0 = vld [vmem:[#allocation3 + $0xe0] sm:$0xff]  ;;  %v99_v1 = vld [vmem:[#allocation3 + $0xf0] sm:$0xff]  ;;  %s1015_s17 = sshll.u32 %s1407_s5, 4  ;;  %s1016_s17 = int_to_ptr.hbm [resolvable:$true] %s1015_s17 }
   0xd   :  { %v129_v2 = vld [vmem:[#allocation6 + $0xe0] sm:$0xff]  ;;  %v131_v3 = vld [vmem:[#allocation6 + $0xf0] sm:$0xff]  ;;  %v98_v5 = vld [vmem:[#allocation3 + $0xe8] sm:$0xff] }
   0xe   :  { %v161_v4 = vadd.f32 %v129_v2, %v97_v0  ;;  %v100_v6 = vld [vmem:[#allocation3 + $0xf8] sm:$0xff]  ;;  %v163_v7 = vadd.f32 %v131_v3, %v99_v1  ;;  %v130_v8 = vld [vmem:[#allocation6 + $0xe8] sm:$0xff]  ;;  %v359_v10 = vld [vmem:[#allocation3 + $0x1e0] sm:$0xff] }
   0xf   :  { %v132_v9 = vld [vmem:[#allocation6 + $0xf8] sm:$0xff]  ;;  %v162_v12 = vadd.f32 %v130_v8, %v98_v5  ;;  %v361_v14 = vld [vmem:[#allocation3 + $0x1f0] sm:$0xff]  ;;  %v391_v15 = vld [vmem:[#allocation6 + $0x1e0] sm:$0xff] }
  0x10   :  { %v193_v11 = vmax.f32 %v161_v4, 0.0  ;;  %v164_v13 = vadd.f32 %v132_v9, %v100_v6  ;;  %v393_v16 = vld [vmem:[#allocation6 + $0x1f0] sm:$0xff]  ;;  %v195_v17 = vmax.f32 %v163_v7, 0.0  ;;  %v423_v18 = vadd.f32 %v391_v15, %v359_v10  ;;  %v360_v20 = vld [vmem:[#allocation3 + $0x1e8] sm:$0xff]  ;;  %v362_v21 = vld [vmem:[#allocation3 + $0x1f8] sm:$0xff] }
  0x11   :  { %v425_v19 = vadd.f32 %v393_v16, %v361_v14  ;;  %v392_v22 = vld [vmem:[#allocation6 + $0x1e8] sm:$0xff]  ;;  %v194_v23 = vmax.f32 %v162_v12, 0.0  ;;  %v394_v25 = vld [vmem:[#allocation6 + $0x1f8] sm:$0xff]  ;;  %v93_v27 = vld [vmem:[#allocation3 + $0xc0] sm:$0xff] }
  0x12   :  { %v196_v24 = vmax.f32 %v164_v13, 0.0  ;;  %v424_v26 = vadd.f32 %v392_v22, %v360_v20  ;;  %v95_v28 = vld [vmem:[#allocation3 + $0xd0] sm:$0xff]  ;;  %v239_v29 = vpack.c.bf16 %v195_v17, %v193_v11  ;;  %v455_v30 = vmax.f32 %v423_v18, 0.0  ;;  %v125_v33 = vld [vmem:[#allocation6 + $0xc0] sm:$0xff]  ;;  %v94_v35 = vld [vmem:[#allocation3 + $0xc8] sm:$0xff] }
  0x13   :  { %v457_v31 = vmax.f32 %v425_v19, 0.0  ;;  %v426_v32 = vadd.f32 %v394_v25, %v362_v21  ;;  %v127_v34 = vld [vmem:[#allocation6 + $0xd0] sm:$0xff]  ;;  %v157_v38 = vadd.f32 %v125_v33, %v93_v27  ;;  %v96_v40 = vld [vmem:[#allocation3 + $0xd8] sm:$0xff]  ;;  %v126_v41 = vld [vmem:[#allocation6 + $0xc8] sm:$0xff] }
  0x14   :  { %v240_v36 = vpack.c.bf16 %v196_v24, %v194_v23  ;;  %v456_v37 = vmax.f32 %v424_v26, 0.0  ;;  %v159_v39 = vadd.f32 %v127_v34, %v95_v28  ;;  %v128_v42 = vld [vmem:[#allocation6 + $0xd8] sm:$0xff]  ;;  %241 = vmatpush.bf16.msra.mxu0 %v239_v29  ;;  %v158_v45 = vadd.f32 %v126_v41, %v94_v35  ;;  %v355_v47 = vld [vmem:[#allocation3 + $0x1c0] sm:$0xff]  ;;  %v357_v48 = vld [vmem:[#allocation3 + $0x1d0] sm:$0xff] }
  0x15   :  { %v501_v43 = vpack.c.bf16 %v457_v31, %v455_v30  ;;  %v458_v44 = vmax.f32 %v426_v32, 0.0  ;;  %v160_v46 = vadd.f32 %v128_v42, %v96_v40  ;;  %v387_v49 = vld [vmem:[#allocation6 + $0x1c0] sm:$0xff]  ;;  %v189_v50 = vmax.f32 %v157_v38, 0.0  ;;  %v389_v52 = vld [vmem:[#allocation6 + $0x1d0] sm:$0xff]  ;;  %v356_v54 = vld [vmem:[#allocation3 + $0x1c8] sm:$0xff] }
  0x16   :  { %270 = vmatpush.bf16.msra.mxu1 %v240_v36  ;;  %v191_v51 = vmax.f32 %v159_v39, 0.0  ;;  %v419_v53 = vadd.f32 %v387_v49, %v355_v47  ;;  %v358_v55 = vld [vmem:[#allocation3 + $0x1d8] sm:$0xff]  ;;  %v190_v57 = vmax.f32 %v158_v45, 0.0  ;;  %v421_v59 = vadd.f32 %v389_v52, %v357_v48  ;;  %v388_v60 = vld [vmem:[#allocation6 + $0x1c8] sm:$0xff]  ;;  %v89_v62 = vld [vmem:[#allocation3 + $0xa0] sm:$0xff] }
  0x17   :  { %503 = vmatpush.bf16.msra.mxu2 %v501_v43  ;;  %v502_v56 = vpack.c.bf16 %v458_v44, %v456_v37  ;;  %v192_v58 = vmax.f32 %v160_v46, 0.0  ;;  %v390_v61 = vld [vmem:[#allocation6 + $0x1d8] sm:$0xff]  ;;  %v420_v1 = vadd.f32 %v388_v60, %v356_v54  ;;  %v91_v3 = vld [vmem:[#allocation3 + $0xb0] sm:$0xff]  ;;  %v121_v4 = vld [vmem:[#allocation6 + $0xa0] sm:$0xff] }
  0x18   :  { %v237_v63 = vpack.c.bf16 %v191_v51, %v189_v50  ;;  %v451_v0 = vmax.f32 %v419_v53, 0.0  ;;  %v422_v2 = vadd.f32 %v390_v61, %v358_v55  ;;  %v123_v5 = vld [vmem:[#allocation6 + $0xb0] sm:$0xff]  ;;  %v453_v7 = vmax.f32 %v421_v59, 0.0  ;;  %v90_v10 = vld [vmem:[#allocation3 + $0xa8] sm:$0xff]  ;;  %v92_v11 = vld [vmem:[#allocation3 + $0xb8] sm:$0xff] }
  0x19   :  { %532 = vmatpush.bf16.msra.mxu3 %v502_v56  ;;  %v238_v6 = vpack.c.bf16 %v192_v58, %v190_v57  ;;  %v153_v8 = vadd.f32 %v121_v4, %v89_v62  ;;  %v155_v9 = vadd.f32 %v123_v5, %v91_v3  ;;  %v122_v12 = vld [vmem:[#allocation6 + $0xa8] sm:$0xff]  ;;  %v452_v13 = vmax.f32 %v420_v1, 0.0  ;;  %v124_v15 = vld [vmem:[#allocation6 + $0xb8] sm:$0xff]  ;;  %v351_v17 = vld [vmem:[#allocation3 + $0x1a0] sm:$0xff] }
  0x1a   :  { %242 = vmatpush.bf16.msra.mxu0 %v237_v63  ;;  %v454_v14 = vmax.f32 %v422_v2, 0.0  ;;  %v154_v16 = vadd.f32 %v122_v12, %v90_v10  ;;  %v353_v18 = vld [vmem:[#allocation3 + $0x1b0] sm:$0xff]  ;;  %v499_v19 = vpack.c.bf16 %v453_v7, %v451_v0  ;;  %v156_v22 = vadd.f32 %v124_v15, %v92_v11  ;;  %v383_v23 = vld [vmem:[#allocation6 + $0x1a0] sm:$0xff]  ;;  %v352_v25 = vld [vmem:[#allocation3 + $0x1a8] sm:$0xff] }
  0x1b   :  { %271 = vmatpush.bf16.msra.mxu1 %v238_v6  ;;  %v185_v20 = vmax.f32 %v153_v8, 0.0  ;;  %v187_v21 = vmax.f32 %v155_v9, 0.0  ;;  %v385_v24 = vld [vmem:[#allocation6 + $0x1b0] sm:$0xff]  ;;  %v415_v28 = vadd.f32 %v383_v23, %v351_v17  ;;  %v354_v30 = vld [vmem:[#allocation3 + $0x1b8] sm:$0xff]  ;;  %v384_v31 = vld [vmem:[#allocation6 + $0x1a8] sm:$0xff] }
  0x1c   :  { %v500_v26 = vpack.c.bf16 %v454_v14, %v452_v13  ;;  %v186_v27 = vmax.f32 %v154_v16, 0.0  ;;  %v417_v29 = vadd.f32 %v385_v24, %v353_v18  ;;  %v386_v32 = vld [vmem:[#allocation6 + $0x1b8] sm:$0xff]  ;;  %504 = vmatpush.bf16.msra.mxu2 %v499_v19  ;;  %v188_v34 = vmax.f32 %v156_v22, 0.0  ;;  %v85_v37 = vld [vmem:[#allocation3 + $0x80] sm:$0xff]  ;;  %v87_v38 = vld [vmem:[#allocation3 + $0x90] sm:$0xff] }
  0x1d   :  { %v235_v33 = vpack.c.bf16 %v187_v21, %v185_v20  ;;  %v416_v35 = vadd.f32 %v384_v31, %v352_v25  ;;  %v418_v36 = vadd.f32 %v386_v32, %v354_v30  ;;  %v117_v39 = vld [vmem:[#allocation6 + $0x80] sm:$0xff]  ;;  %v447_v40 = vmax.f32 %v415_v28, 0.0  ;;  %v119_v42 = vld [vmem:[#allocation6 + $0x90] sm:$0xff]  ;;  %v86_v44 = vld [vmem:[#allocation3 + $0x88] sm:$0xff] }
  0x1e   :  { %533 = vmatpush.bf16.msra.mxu3 %v500_v26  ;;  %v449_v41 = vmax.f32 %v417_v29, 0.0  ;;  %v149_v43 = vadd.f32 %v117_v39, %v85_v37  ;;  %v88_v45 = vld [vmem:[#allocation3 + $0x98] sm:$0xff]  ;;  %v236_v46 = vpack.c.bf16 %v188_v34, %v186_v27  ;;  %v151_v49 = vadd.f32 %v119_v42, %v87_v38  ;;  %v118_v50 = vld [vmem:[#allocation6 + $0x88] sm:$0xff]  ;;  %v347_v52 = vld [vmem:[#allocation3 + $0x180] sm:$0xff] }
  0x1f   :  { %243 = vmatpush.bf16.msra.mxu0 %v235_v33  ;;  %v448_v47 = vmax.f32 %v416_v35, 0.0  ;;  %v450_v48 = vmax.f32 %v418_v36, 0.0  ;;  %v120_v51 = vld [vmem:[#allocation6 + $0x98] sm:$0xff]  ;;  %v150_v55 = vadd.f32 %v118_v50, %v86_v44  ;;  %v349_v57 = vld [vmem:[#allocation3 + $0x190] sm:$0xff]  ;;  %v379_v58 = vld [vmem:[#allocation6 + $0x180] sm:$0xff] }
  0x20   :  { %v497_v53 = vpack.c.bf16 %v449_v41, %v447_v40  ;;  %v181_v54 = vmax.f32 %v149_v43, 0.0  ;;  %v152_v56 = vadd.f32 %v120_v51, %v88_v45  ;;  %v381_v59 = vld [vmem:[#allocation6 + $0x190] sm:$0xff]  ;;  %272 = vmatpush.bf16.msra.mxu1 %v236_v46  ;;  %v183_v61 = vmax.f32 %v151_v49, 0.0  ;;  %v348_v0 = vld [vmem:[#allocation3 + $0x188] sm:$0xff]  ;;  %v350_v1 = vld [vmem:[#allocation3 + $0x198] sm:$0xff] }
  0x21   :  { %v498_v60 = vpack.c.bf16 %v450_v48, %v448_v47  ;;  %v411_v62 = vadd.f32 %v379_v58, %v347_v52  ;;  %v413_v63 = vadd.f32 %v381_v59, %v349_v57  ;;  %v380_v2 = vld [vmem:[#allocation6 + $0x188] sm:$0xff]  ;;  %v182_v3 = vmax.f32 %v150_v55, 0.0  ;;  %v382_v5 = vld [vmem:[#allocation6 + $0x198] sm:$0xff]  ;;  %v81_v7 = vld [vmem:[#allocation3 + $0x60] sm:$0xff] }
  0x22   :  { %505 = vmatpush.bf16.msra.mxu2 %v497_v53  ;;  %v184_v4 = vmax.f32 %v152_v56, 0.0  ;;  %v412_v6 = vadd.f32 %v380_v2, %v348_v0  ;;  %v83_v8 = vld [vmem:[#allocation3 + $0x70] sm:$0xff]  ;;  %v233_v9 = vpack.c.bf16 %v183_v61, %v181_v54  ;;  %v414_v12 = vadd.f32 %v382_v5, %v350_v1  ;;  %v113_v13 = vld [vmem:[#allocation6 + $0x60] sm:$0xff]  ;;  %v82_v15 = vld [vmem:[#allocation3 + $0x68] sm:$0xff] }
  0x23   :  { %534 = vmatpush.bf16.msra.mxu3 %v498_v60  ;;  %v443_v10 = vmax.f32 %v411_v62, 0.0  ;;  %v445_v11 = vmax.f32 %v413_v63, 0.0  ;;  %v115_v14 = vld [vmem:[#allocation6 + $0x70] sm:$0xff]  ;;  %v145_v18 = vadd.f32 %v113_v13, %v81_v7  ;;  %v84_v20 = vld [vmem:[#allocation3 + $0x78] sm:$0xff]  ;;  %v114_v21 = vld [vmem:[#allocation6 + $0x68] sm:$0xff] }
  0x24   :  { %v234_v16 = vpack.c.bf16 %v184_v4, %v182_v3  ;;  %v444_v17 = vmax.f32 %v412_v6, 0.0  ;;  %v147_v19 = vadd.f32 %v115_v14, %v83_v8  ;;  %v116_v22 = vld [vmem:[#allocation6 + $0x78] sm:$0xff]  ;;  %244 = vmatpush.bf16.msra.mxu0 %v233_v9  ;;  %v446_v24 = vmax.f32 %v414_v12, 0.0  ;;  %v343_v27 = vld [vmem:[#allocation3 + $0x160] sm:$0xff]  ;;  %v345_v28 = vld [vmem:[#allocation3 + $0x170] sm:$0xff] }
  0x25   :  { %v495_v23 = vpack.c.bf16 %v445_v11, %v443_v10  ;;  %v146_v25 = vadd.f32 %v114_v21, %v82_v15  ;;  %v148_v26 = vadd.f32 %v116_v22, %v84_v20  ;;  %v375_v29 = vld [vmem:[#allocation6 + $0x160] sm:$0xff]  ;;  %v177_v30 = vmax.f32 %v145_v18, 0.0  ;;  %v377_v32 = vld [vmem:[#allocation6 + $0x170] sm:$0xff]  ;;  %v344_v34 = vld [vmem:[#allocation3 + $0x168] sm:$0xff] }
  0x26   :  { %273 = vmatpush.bf16.msra.mxu1 %v234_v16  ;;  %v179_v31 = vmax.f32 %v147_v19, 0.0  ;;  %v407_v33 = vadd.f32 %v375_v29, %v343_v27  ;;  %v346_v35 = vld [vmem:[#allocation3 + $0x178] sm:$0xff]  ;;  %v496_v36 = vpack.c.bf16 %v446_v24, %v444_v17  ;;  %v409_v39 = vadd.f32 %v377_v32, %v345_v28  ;;  %v376_v40 = vld [vmem:[#allocation6 + $0x168] sm:$0xff]  ;;  %v77_v42 = vld [vmem:[#allocation3 + $0x40] sm:$0xff] }
  0x27   :  { %506 = vmatpush.bf16.msra.mxu2 %v495_v23  ;;  %v178_v37 = vmax.f32 %v146_v25, 0.0  ;;  %v180_v38 = vmax.f32 %v148_v26, 0.0  ;;  %v378_v41 = vld [vmem:[#allocation6 + $0x178] sm:$0xff]  ;;  %v408_v45 = vadd.f32 %v376_v40, %v344_v34  ;;  %v79_v47 = vld [vmem:[#allocation3 + $0x50] sm:$0xff]  ;;  %v109_v48 = vld [vmem:[#allocation6 + $0x40] sm:$0xff] }
  0x28   :  { %v231_v43 = vpack.c.bf16 %v179_v31, %v177_v30  ;;  %v439_v44 = vmax.f32 %v407_v33, 0.0  ;;  %v410_v46 = vadd.f32 %v378_v41, %v346_v35  ;;  %v111_v49 = vld [vmem:[#allocation6 + $0x50] sm:$0xff]  ;;  %535 = vmatpush.bf16.msra.mxu3 %v496_v36  ;;  %v441_v51 = vmax.f32 %v409_v39, 0.0  ;;  %v78_v54 = vld [vmem:[#allocation3 + $0x48] sm:$0xff]  ;;  %v80_v55 = vld [vmem:[#allocation3 + $0x58] sm:$0xff] }
  0x29   :  { %v232_v50 = vpack.c.bf16 %v180_v38, %v178_v37  ;;  %v141_v52 = vadd.f32 %v109_v48, %v77_v42  ;;  %v143_v53 = vadd.f32 %v111_v49, %v79_v47  ;;  %v110_v56 = vld [vmem:[#allocation6 + $0x48] sm:$0xff]  ;;  %v440_v57 = vmax.f32 %v408_v45, 0.0  ;;  %v112_v59 = vld [vmem:[#allocation6 + $0x58] sm:$0xff]  ;;  %v339_v61 = vld [vmem:[#allocation3 + $0x140] sm:$0xff] }
  0x2a   :  { %245 = vmatpush.bf16.msra.mxu0 %v231_v43  ;;  %v442_v58 = vmax.f32 %v410_v46, 0.0  ;;  %v142_v60 = vadd.f32 %v110_v56, %v78_v54  ;;  %v341_v62 = vld [vmem:[#allocation3 + $0x150] sm:$0xff]  ;;  %v493_v63 = vpack.c.bf16 %v441_v51, %v439_v44  ;;  %v144_v2 = vadd.f32 %v112_v59, %v80_v55  ;;  %v371_v3 = vld [vmem:[#allocation6 + $0x140] sm:$0xff]  ;;  %v340_v5 = vld [vmem:[#allocation3 + $0x148] sm:$0xff] }
  0x2b   :  { %274 = vmatpush.bf16.msra.mxu1 %v232_v50  ;;  %v173_v0 = vmax.f32 %v141_v52, 0.0  ;;  %v175_v1 = vmax.f32 %v143_v53, 0.0  ;;  %v373_v4 = vld [vmem:[#allocation6 + $0x150] sm:$0xff]  ;;  %v403_v8 = vadd.f32 %v371_v3, %v339_v61  ;;  %v342_v10 = vld [vmem:[#allocation3 + $0x158] sm:$0xff]  ;;  %v372_v11 = vld [vmem:[#allocation6 + $0x148] sm:$0xff] }
  0x2c   :  { %v494_v6 = vpack.c.bf16 %v442_v58, %v440_v57  ;;  %v174_v7 = vmax.f32 %v142_v60, 0.0  ;;  %v405_v9 = vadd.f32 %v373_v4, %v341_v62  ;;  %v374_v12 = vld [vmem:[#allocation6 + $0x158] sm:$0xff]  ;;  %507 = vmatpush.bf16.msra.mxu2 %v493_v63  ;;  %v176_v14 = vmax.f32 %v144_v2, 0.0  ;;  %v73_v17 = vld [vmem:[#allocation3 + $0x20] sm:$0xff]  ;;  %v75_v18 = vld [vmem:[#allocation3 + $0x30] sm:$0xff] }
  0x2d   :  { %v229_v13 = vpack.c.bf16 %v175_v1, %v173_v0  ;;  %v404_v15 = vadd.f32 %v372_v11, %v340_v5  ;;  %v406_v16 = vadd.f32 %v374_v12, %v342_v10  ;;  %v105_v19 = vld [vmem:[#allocation6 + $0x20] sm:$0xff]  ;;  %v435_v20 = vmax.f32 %v403_v8, 0.0  ;;  %v107_v22 = vld [vmem:[#allocation6 + $0x30] sm:$0xff]  ;;  %v74_v24 = vld [vmem:[#allocation3 + $0x28] sm:$0xff] }
  0x2e   :  { %536 = vmatpush.bf16.msra.mxu3 %v494_v6  ;;  %v437_v21 = vmax.f32 %v405_v9, 0.0  ;;  %v137_v23 = vadd.f32 %v105_v19, %v73_v17  ;;  %v76_v25 = vld [vmem:[#allocation3 + $0x38] sm:$0xff]  ;;  %v230_v26 = vpack.c.bf16 %v176_v14, %v174_v7  ;;  %v139_v29 = vadd.f32 %v107_v22, %v75_v18  ;;  %v106_v30 = vld [vmem:[#allocation6 + $0x28] sm:$0xff]  ;;  %v335_v32 = vld [vmem:[#allocation3 + $0x120] sm:$0xff] }
  0x2f   :  { %246 = vmatpush.bf16.msra.mxu0 %v229_v13  ;;  %v436_v27 = vmax.f32 %v404_v15, 0.0  ;;  %v438_v28 = vmax.f32 %v406_v16, 0.0  ;;  %v108_v31 = vld [vmem:[#allocation6 + $0x38] sm:$0xff]  ;;  %v138_v35 = vadd.f32 %v106_v30, %v74_v24  ;;  %v337_v37 = vld [vmem:[#allocation3 + $0x130] sm:$0xff]  ;;  %v367_v38 = vld [vmem:[#allocation6 + $0x120] sm:$0xff] }
  0x30   :  { %v491_v33 = vpack.c.bf16 %v437_v21, %v435_v20  ;;  %v169_v34 = vmax.f32 %v137_v23, 0.0  ;;  %v140_v36 = vadd.f32 %v108_v31, %v76_v25  ;;  %v369_v39 = vld [vmem:[#allocation6 + $0x130] sm:$0xff]  ;;  %275 = vmatpush.bf16.msra.mxu1 %v230_v26  ;;  %v171_v41 = vmax.f32 %v139_v29, 0.0  ;;  %v336_v44 = vld [vmem:[#allocation3 + $0x128] sm:$0xff]  ;;  %v338_v45 = vld [vmem:[#allocation3 + $0x138] sm:$0xff] }
  0x31   :  { %v492_v40 = vpack.c.bf16 %v438_v28, %v436_v27  ;;  %v399_v42 = vadd.f32 %v367_v38, %v335_v32  ;;  %v401_v43 = vadd.f32 %v369_v39, %v337_v37  ;;  %v368_v46 = vld [vmem:[#allocation6 + $0x128] sm:$0xff]  ;;  %v170_v47 = vmax.f32 %v138_v35, 0.0  ;;  %v370_v49 = vld [vmem:[#allocation6 + $0x138] sm:$0xff]  ;;  %v69_v51 = vld [vmem:[#allocation3] sm:$0xff] }
  0x32   :  { %508 = vmatpush.bf16.msra.mxu2 %v491_v33  ;;  %v172_v48 = vmax.f32 %v140_v36, 0.0  ;;  %v400_v50 = vadd.f32 %v368_v46, %v336_v44  ;;  %v71_v52 = vld [vmem:[#allocation3 + $0x10] sm:$0xff]  ;;  %v227_v53 = vpack.c.bf16 %v171_v41, %v169_v34  ;;  %v402_v56 = vadd.f32 %v370_v49, %v338_v45  ;;  %v101_v57 = vld [vmem:[#allocation6] sm:$0xff]  ;;  %v70_v59 = vld [vmem:[#allocation3 + $0x8] sm:$0xff] }
  0x33   :  { %537 = vmatpush.bf16.msra.mxu3 %v492_v40  ;;  %v431_v54 = vmax.f32 %v399_v42, 0.0  ;;  %v433_v55 = vmax.f32 %v401_v43, 0.0  ;;  %v103_v58 = vld [vmem:[#allocation6 + $0x10] sm:$0xff]  ;;  %v133_v62 = vadd.f32 %v101_v57, %v69_v51  ;;  %v72_v0 = vld [vmem:[#allocation3 + $0x18] sm:$0xff]  ;;  %v102_v1 = vld [vmem:[#allocation6 + $0x8] sm:$0xff] }
  0x34   :  { %v228_v60 = vpack.c.bf16 %v172_v48, %v170_v47  ;;  %v432_v61 = vmax.f32 %v400_v50, 0.0  ;;  %v135_v63 = vadd.f32 %v103_v58, %v71_v52  ;;  %v104_v2 = vld [vmem:[#allocation6 + $0x18] sm:$0xff]  ;;  %247 = vmatpush.bf16.msra.mxu0 %v227_v53  ;;  %v434_v4 = vmax.f32 %v402_v56, 0.0  ;;  %v331_v7 = vld [vmem:[#allocation3 + $0x100] sm:$0xff]  ;;  %v333_v8 = vld [vmem:[#allocation3 + $0x110] sm:$0xff] }
  0x35   :  { %v489_v3 = vpack.c.bf16 %v433_v55, %v431_v54  ;;  %v134_v5 = vadd.f32 %v102_v1, %v70_v59  ;;  %v136_v6 = vadd.f32 %v104_v2, %v72_v0  ;;  %v363_v9 = vld [vmem:[#allocation6 + $0x100] sm:$0xff]  ;;  %v165_v10 = vmax.f32 %v133_v62, 0.0  ;;  %v365_v12 = vld [vmem:[#allocation6 + $0x110] sm:$0xff]  ;;  %v332_v14 = vld [vmem:[#allocation3 + $0x108] sm:$0xff] }
  0x36   :  { %276 = vmatpush.bf16.msra.mxu1 %v228_v60  ;;  %v167_v11 = vmax.f32 %v135_v63, 0.0  ;;  %v395_v13 = vadd.f32 %v363_v9, %v331_v7  ;;  %v334_v15 = vld [vmem:[#allocation3 + $0x118] sm:$0xff]  ;;  %v490_v16 = vpack.c.bf16 %v434_v4, %v432_v61  ;;  %v397_v19 = vadd.f32 %v365_v12, %v333_v8  ;;  %v364_v20 = vld [vmem:[#allocation6 + $0x108] sm:$0xff]  ;;  %v197_v22 = vld [vmem:[%s1404_s2] sm:$0xff] }
  0x37   :  { %509 = vmatpush.bf16.msra.mxu2 %v489_v3  ;;  %v166_v17 = vmax.f32 %v134_v5, 0.0  ;;  %v168_v18 = vmax.f32 %v136_v6, 0.0  ;;  %v366_v21 = vld [vmem:[#allocation6 + $0x118] sm:$0xff]  ;;  %v396_v25 = vadd.f32 %v364_v20, %v332_v14  ;;  %v198_v27 = vld [vmem:[%s1404_s2 + $0x10] sm:$0xff]  ;;  %v459_v31 = vld [vmem:[%s1404_s2 + $0x8] sm:$0xff] }
  0x38   :  { %v225_v23 = vpack.c.bf16 %v167_v11, %v165_v10  ;;  %v427_v24 = vmax.f32 %v395_v13, 0.0  ;;  %v398_v26 = vadd.f32 %v366_v21, %v334_v15  ;;  %538 = vmatpush.bf16.msra.mxu3 %v490_v16  ;;  %v429_v29 = vmax.f32 %v397_v19, 0.0  ;;  %v460_v32 = vld [vmem:[%s1404_s2 + $0x18] sm:$0xff]  ;;  %v199_v38 = vld [vmem:[%s1404_s2 + $0x20] sm:$0xff]  ;;  %v200_v39 = vld [vmem:[%s1404_s2 + $0x30] sm:$0xff] }
  0x39   :  { %v226_v28 = vpack.c.bf16 %v168_v18, %v166_v17  ;;  %v221_v30 = vpack.c.bf16 %v198_v27, %v197_v22  ;;  %v428_v33 = vmax.f32 %v396_v25, 0.0  ;;  %v483_v37 = vpack.c.bf16 %v460_v32, %v459_v31  ;;  %v461_v41 = vld [vmem:[%s1404_s2 + $0x28] sm:$0xff]  ;;  %v462_v42 = vld [vmem:[%s1404_s2 + $0x38] sm:$0xff]  ;;  %v201_v44 = vld [vmem:[%s1404_s2 + $0x40] sm:$0xff] }
  0x3a   :  { %248 = vmatpush.bf16.msra.mxu0 %v225_v23  ;;  %v430_v34 = vmax.f32 %v398_v26, 0.0  ;;  %v487_v35 = vpack.c.bf16 %v429_v29, %v427_v24  ;;  %v222_v40 = vpack.c.bf16 %v200_v39, %v199_v38  ;;  %v484_v43 = vpack.c.bf16 %v462_v42, %v461_v41  ;;  %v202_v45 = vld [vmem:[%s1404_s2 + $0x50] sm:$0xff]  ;;  %v463_v47 = vld [vmem:[%s1404_s2 + $0x48] sm:$0xff]  ;;  %v464_v48 = vld [vmem:[%s1404_s2 + $0x58] sm:$0xff] }
  0x3b   :  { %277 = vmatpush.bf16.msra.mxu1 %v226_v28  ;;  %v223_v46 = vpack.c.bf16 %v202_v45, %v201_v44  ;;  %v485_v49 = vpack.c.bf16 %v464_v48, %v463_v47  ;;  %v203_v50 = vld [vmem:[%s1404_s2 + $0x60] sm:$0xff]  ;;  %v204_v51 = vld [vmem:[%s1404_s2 + $0x70] sm:$0xff]  ;;  %v465_v53 = vld [vmem:[%s1404_s2 + $0x68] sm:$0xff] }
  0x3c   :  { %v488_v36 = vpack.c.bf16 %v430_v34, %v428_v33  ;;  %510 = vmatpush.bf16.msra.mxu2 %v487_v35  ;;  %v224_v52 = vpack.c.bf16 %v204_v51, %v203_v50  ;;  %v466_v54 = vld [vmem:[%s1404_s2 + $0x78] sm:$0xff] }
  0x3d   :  { %249 = vmatmul.bf16.vlgmr.msra.gmra.mxu0 %v221_v30  ;;  %v486_v55 = vpack.c.bf16 %v466_v54, %v465_v53 }
  0x3e   :  { %539 = vmatpush.bf16.msra.mxu3 %v488_v36  ;;  %278 = vmatmul.bf16.vlgmr.msra.gmra.mxu1 %v221_v30 }
  0x3f   :  { %511 = vmatmul.bf16.vlgmr.msra.gmra.mxu2 %v483_v37 }
  0x41   :  { %540 = vmatmul.bf16.vlgmr.msra.gmra.mxu3 %v483_v37 }
  0x4d   :  { %254 = vmatmul.bf16.gmra.mxu0 %v222_v40 }
  0x4e   :  { %283 = vmatmul.bf16.gmra.mxu1 %v222_v40 }
  0x4f   :  { %516 = vmatmul.bf16.gmra.mxu2 %v484_v43 }
  0x51   :  { %545 = vmatmul.bf16.gmra.mxu3 %v484_v43 }
  0x5d   :  { %259 = vmatmul.bf16.gmra.mxu0 %v223_v46 }
  0x5e   :  { %288 = vmatmul.bf16.gmra.mxu1 %v223_v46 }
  0x5f   :  { %521 = vmatmul.bf16.gmra.mxu2 %v485_v49 }
  0x61   :  { %550 = vmatmul.bf16.gmra.mxu3 %v485_v49 }
  0x6d   :  { %264 = vmatmul.bf16.gmra.mxu0 %v224_v52 }
  0x6e   :  { %293 = vmatmul.bf16.gmra.mxu1 %v224_v52 }
  0x6f   :  { %526 = vmatmul.bf16.gmra.mxu2 %v486_v55 }
  0x71   :  { %555 = vmatmul.bf16.gmra.mxu3 %v486_v55 }
  0xba   :  { %v250_v56 = vpop.f32.mrf.mxu0 }
  0xbb   :  { %v279_v57 = vpop.f32.mrf.mxu1 }
  0xc2   :  { %v252_v58 = vpop.f32.mrf.mxu0  ;;  %v512_v59 = vpop.f32.mrf.mxu2 }
  0xc3   :  { %v281_v60 = vpop.f32.mrf.mxu1  ;;  %v1228_v61 = vadd.f32 %v512_v59, %v250_v56 }
  0xc4   :  { %v541_v62 = vpop.f32.mrf.mxu3 }
  0xc5   :  { %v1230_v63 = vadd.f32 %v541_v62, %v279_v57 }
  0xc7   :  { %v641_v0 = vadd.f32 %v1230_v63, %v1228_v61 }
  0xc9   :  { %642 = vadd.xlane.f32.xlu0 %v641_v0 }
  0xca   :  { %v255_v1 = vpop.f32.mrf.mxu0  ;;  %v514_v2 = vpop.f32.mrf.mxu2 }
  0xcb   :  { %v284_v3 = vpop.f32.mrf.mxu1  ;;  %v1234_v4 = vadd.f32 %v514_v2, %v252_v58 }
  0xcc   :  { %v543_v5 = vpop.f32.mrf.mxu3 }
  0xcd   :  { %v1236_v6 = vadd.f32 %v543_v5, %v281_v60 }
  0xcf   :  { %v644_v7 = vadd.f32 %v1236_v6, %v1234_v4 }
  0xd1   :  { %645 = vadd.xlane.f32.xlu0 %v644_v7 }
  0xd2   :  { %v517_v8 = vpop.f32.mrf.mxu2  ;;  %v257_v9 = vpop.f32.mrf.mxu0 }
  0xd3   :  { %v1240_v10 = vadd.f32 %v517_v8, %v255_v1  ;;  %v286_v12 = vpop.f32.mrf.mxu1 }
  0xd4   :  { %v546_v11 = vpop.f32.mrf.mxu3 }
  0xd5   :  { %v1242_v13 = vadd.f32 %v546_v11, %v284_v3 }
  0xd7   :  { %v647_v14 = vadd.f32 %v1242_v13, %v1240_v10 }
  0xd9   :  { %648 = vadd.xlane.f32.xlu1 %v647_v14 }
  0xda   :  { %v519_v15 = vpop.f32.mrf.mxu2  ;;  %v260_v19 = vpop.f32.mrf.mxu0 }
  0xdb   :  { %v1246_v16 = vadd.f32 %v519_v15, %v257_v9  ;;  %v289_v20 = vpop.f32.mrf.mxu1 }
  0xdc   :  { %v548_v17 = vpop.f32.mrf.mxu3 }
  0xdd   :  { %v1248_v18 = vadd.f32 %v548_v17, %v286_v12 }
  0xdf   :  { %v650_v21 = vadd.f32 %v1248_v18, %v1246_v16 }
  0xe1   :  { %651 = vadd.xlane.f32.xlu1 %v650_v21 }
  0xe2   :  { %v522_v22 = vpop.f32.mrf.mxu2  ;;  %v262_v26 = vpop.f32.mrf.mxu0 }
  0xe3   :  { %v1252_v23 = vadd.f32 %v522_v22, %v260_v19  ;;  %v291_v28 = vpop.f32.mrf.mxu1 }
  0xe4   :  { %v551_v24 = vpop.f32.mrf.mxu3 }
  0xe5   :  { %v1254_v25 = vadd.f32 %v551_v24, %v289_v20 }
  0xe7   :  { %v653_v27 = vadd.f32 %v1254_v25, %v1252_v23 }
  0xe9   :  { %654 = vadd.xlane.f32.xlu2 %v653_v27 }
  0xea   :  { %v524_v29 = vpop.f32.mrf.mxu2  ;;  %v265_v34 = vpop.f32.mrf.mxu0 }
  0xeb   :  { %v1258_v30 = vadd.f32 %v524_v29, %v262_v26  ;;  %v294_v35 = vpop.f32.mrf.mxu1 }
  0xec   :  { %v553_v31 = vpop.f32.mrf.mxu3 }
  0xed   :  { %v1260_v32 = vadd.f32 %v553_v31, %v291_v28 }
  0xef   :  { %v656_v33 = vadd.f32 %v1260_v32, %v1258_v30 }
  0xf1   :  { %657 = vadd.xlane.f32.xlu2 %v656_v33 }
  0xf2   :  { %v527_v36 = vpop.f32.mrf.mxu2  ;;  %v267_v41 = vpop.f32.mrf.mxu0 }
  0xf3   :  { %v1264_v37 = vadd.f32 %v527_v36, %v265_v34  ;;  %v296_v43 = vpop.f32.mrf.mxu1 }
  0xf4   :  { %v556_v38 = vpop.f32.mrf.mxu3 }
  0xf5   :  { %v1266_v39 = vadd.f32 %v556_v38, %v294_v35 }
  0xf7   :  { %v659_v40 = vadd.f32 %v1266_v39, %v1264_v37 }
  0xf9   :  { %660 = vadd.xlane.f32.xlu0 %v659_v40 }
  0xfa   :  { %v529_v42 = vpop.f32.mrf.mxu2 }
  0xfb   :  { %v1270_v44 = vadd.f32 %v529_v42, %v267_v41 }
  0xfc   :  { %v558_v45 = vpop.f32.mrf.mxu3 }
  0xfd   :  { %v1272_v46 = vadd.f32 %v558_v45, %v296_v43 }
  0xff   :  { %v662_v47 = vadd.f32 %v1272_v46, %v1270_v44 }
 0x101   :  { %663 = vadd.xlane.f32.xlu1 %v662_v47 }
 0x13c   :  { %v643_v48 = vpop.xlane.xlu0 %642 }
 0x13d   :  { %v1276_v49 = vmul.f32 0.00390625, %v643_v48 }
 0x13f   :  { %v681_v50 = vsub.f32 %v1228_v61, %v1276_v49  ;;  %v682_v51 = vsub.f32 %v1230_v63, %v1276_v49 }
 0x141   :  { %v697_v52 = vmul.f32 %v681_v50, %v681_v50  ;;  %v698_v53 = vmul.f32 %v682_v51, %v682_v51 }
 0x143   :  { %v713_v54 = vadd.f32 %v698_v53, %v697_v52 }
 0x144   :  { %v646_v55 = vpop.xlane.xlu0 %645 }
 0x145   :  { %v1282_v56 = vmul.f32 0.00390625, %v646_v55  ;;  %714 = vadd.xlane.f32.xlu2 %v713_v54 }
 0x147   :  { %v683_v57 = vsub.f32 %v1234_v4, %v1282_v56  ;;  %v684_v58 = vsub.f32 %v1236_v6, %v1282_v56 }
 0x149   :  { %v699_v59 = vmul.f32 %v683_v57, %v683_v57  ;;  %v700_v60 = vmul.f32 %v684_v58, %v684_v58  ;;  %v1136_v58 = vmov 0  }
 0x14a   :  { %1035 = vset.pattern.permute.xlu1 %v1136_v58  ;;  %1036 = vset.pattern.permute.xlu2 %v1136_v58 }
 0x14b   :  { %v716_v62 = vadd.f32 %v700_v60, %v699_v59  ;;  %1037 = vset.pattern.permute.xlu0 %v1136_v58 }
 0x14c   :  { %v649_v0 = vpop.xlane.xlu1 %648 }
 0x14d   :  { %v1288_v1 = vmul.f32 0.00390625, %v649_v0  ;;  %717 = vadd.xlane.f32.xlu0 %v716_v62 }
 0x14f   :  { %v685_v2 = vsub.f32 %v1240_v10, %v1288_v1  ;;  %v686_v3 = vsub.f32 %v1242_v13, %v1288_v1 }
 0x151   :  { %v701_v5 = vmul.f32 %v685_v2, %v685_v2  ;;  %v702_v7 = vmul.f32 %v686_v3, %v686_v3 }
 0x153   :  { %v719_v8 = vadd.f32 %v702_v7, %v701_v5 }
 0x154   :  { %v652_v9 = vpop.xlane.xlu1 %651 }
 0x155   :  { %v1294_v11 = vmul.f32 0.00390625, %v652_v9  ;;  %720 = vadd.xlane.f32.xlu1 %v719_v8 }
 0x157   :  { %v687_v12 = vsub.f32 %v1246_v16, %v1294_v11  ;;  %v688_v14 = vsub.f32 %v1248_v18, %v1294_v11 }
 0x159   :  { %v703_v15 = vmul.f32 %v687_v12, %v687_v12  ;;  %v704_v17 = vmul.f32 %v688_v14, %v688_v14 }
 0x15b   :  { %v722_v19 = vadd.f32 %v704_v17, %v703_v15 }
 0x15c   :  { %v655_v20 = vpop.xlane.xlu2 %654 }
 0x15d   :  { %v1300_v21 = vmul.f32 0.00390625, %v655_v20  ;;  %723 = vadd.xlane.f32.xlu2 %v722_v19 }
 0x15f   :  { %v689_v22 = vsub.f32 %v1252_v23, %v1300_v21  ;;  %v690_v24 = vsub.f32 %v1254_v25, %v1300_v21 }
 0x161   :  { %v705_v26 = vmul.f32 %v689_v22, %v689_v22  ;;  %v706_v27 = vmul.f32 %v690_v24, %v690_v24  ;;  %v841_v24 = vld [vmem:[%s1405_s3] sm:$0xff] }
 0x163   :  { %v725_v28 = vadd.f32 %v706_v27, %v705_v26 }
 0x164   :  { %v658_v29 = vpop.xlane.xlu2 %657 }
 0x165   :  { %v1306_v31 = vmul.f32 0.00390625, %v658_v29  ;;  %726 = vadd.xlane.f32.xlu0 %v725_v28 }
 0x167   :  { %v691_v33 = vsub.f32 %v1258_v30, %v1306_v31  ;;  %v692_v34 = vsub.f32 %v1260_v32, %v1306_v31 }
 0x169   :  { %v707_v35 = vmul.f32 %v691_v33, %v691_v33  ;;  %v708_v36 = vmul.f32 %v692_v34, %v692_v34 }
 0x16b   :  { %v728_v38 = vadd.f32 %v708_v36, %v707_v35 }
 0x16c   :  { %v661_v40 = vpop.xlane.xlu0 %660 }
 0x16d   :  { %v1312_v41 = vmul.f32 0.00390625, %v661_v40  ;;  %729 = vadd.xlane.f32.xlu1 %v728_v38 }
 0x16f   :  { %v693_v42 = vsub.f32 %v1264_v37, %v1312_v41  ;;  %v694_v43 = vsub.f32 %v1266_v39, %v1312_v41 }
 0x171   :  { %v709_v45 = vmul.f32 %v693_v42, %v693_v42  ;;  %v710_v47 = vmul.f32 %v694_v43, %v694_v43 }
 0x173   :  { %v731_v48 = vadd.f32 %v710_v47, %v709_v45  ;;  %v842_v45 = vld [vmem:[%s1405_s3 + $0x8] sm:$0xff]  ;;  %v857_v47 = vld [vmem:[%s1406_s4] sm:$0xff] }
 0x174   :  { %v664_v50 = vpop.xlane.xlu1 %663 }
 0x175   :  { %v1318_v51 = vmul.f32 0.00390625, %v664_v50  ;;  %732 = vadd.xlane.f32.xlu2 %v731_v48 }
 0x177   :  { %v695_v52 = vsub.f32 %v1270_v44, %v1318_v51  ;;  %v696_v53 = vsub.f32 %v1272_v46, %v1318_v51 }
 0x179   :  { %v711_v54 = vmul.f32 %v695_v52, %v695_v52  ;;  %v712_v55 = vmul.f32 %v696_v53, %v696_v53 }
 0x17b   :  { %v734_v57 = vadd.f32 %v712_v55, %v711_v54 }
 0x17d   :  { %735 = vadd.xlane.f32.xlu0 %v734_v57 }
 0x1b8   :  { %v715_v59 = vpop.xlane.xlu2 %714 }
 0x1b9   :  { %v745_v60 = vmul.f32 0.00390625, %v715_v59 }
 0x1bb   :  { %v753_v62 = vadd.f32 1e-05, %v745_v60 }
 0x1bd   :  { %1038 = vrsqrt.f32 %v753_v62  ;;  %vm767_vm1 = vweird.f32 %v753_v62 }
 0x1c0   :  { %v718_v0 = vpop.xlane.xlu0 %717 }
 0x1c1   :  { %v746_v2 = vmul.f32 0.00390625, %v718_v0 }
 0x1c3   :  { %v1039_v3 = vpop.eup %1038  ;;  %v754_v5 = vadd.f32 1e-05, %v746_v2 }
 0x1c4   :  { %v762_v7 = vmul.f32 %v1039_v3, %v753_v62  ;;  %vm768_vm0 = vweird.f32 %v1039_v3 }
 0x1c5   :  { %1040 = vrsqrt.f32 %v754_v5  ;;  %vm769_vm2 = vmor %vm767_vm1, %vm768_vm0  ;;  %vm777_vm4 = vweird.f32 %v754_v5 }
 0x1c6   :  { %v763_v8 = vmul.f32 %v1039_v3, %v762_v7 }
 0x1c8   :  { %v764_v9 = vmul.f32 0.5, %v763_v8  ;;  %v721_v12 = vpop.xlane.xlu1 %720 }
 0x1c9   :  { %v747_v14 = vmul.f32 0.00390625, %v721_v12 }
 0x1ca   :  { %v765_v15 = vsub.f32 1.5, %v764_v9 }
 0x1cb   :  { %v1041_v17 = vpop.eup %1040  ;;  %v755_v19 = vadd.f32 1e-05, %v747_v14  ;;  %v859_v14 = vld [vmem:[%s1406_s4 + $0x10] sm:$0xff] }
 0x1cc   :  { %v772_v20 = vmul.f32 %v1041_v17, %v754_v5  ;;  %v766_v22 = vmul.f32 %v1039_v3, %v765_v15  ;;  %vm778_vm3 = vweird.f32 %v1041_v17  ;;  %v843_v5 = vld [vmem:[%s1405_s3 + $0x10] sm:$0xff] }
 0x1cd   :  { %1042 = vrsqrt.f32 %v755_v19  ;;  %vm779_vm5 = vmor %vm777_vm4, %vm778_vm3  ;;  %vm787_vm7 = vweird.f32 %v755_v19 }
 0x1ce   :  { %v773_v26 = vmul.f32 %v1041_v17, %v772_v20  ;;  %v770_v27 = vsel %vm769_vm2, %v1039_v3, %v766_v22 }
 0x1cf   :  { %v849_v28 = vmul.f32 %v841_v24, %v770_v27 }
 0x1d0   :  { %v774_v29 = vmul.f32 0.5, %v773_v26  ;;  %v724_v33 = vpop.xlane.xlu2 %723 }
 0x1d1   :  { %v748_v34 = vmul.f32 0.00390625, %v724_v33  ;;  %883 = vperm.xlu1 %1035, %v849_v28   ;;  %v865_v40 = vmul.f32 %v849_v28, %v1276_v49  ;;  %v858_v49 = vld [vmem:[%s1406_s4 + $0x8] sm:$0xff]  ;;  %v844_v28 = vld [vmem:[%s1405_s3 + $0x18] sm:$0xff] }
 0x1d2   :  { %v775_v35 = vsub.f32 1.5, %v774_v29 }
 0x1d3   :  { %v1043_v36 = vpop.eup %1042  ;;  %v756_v38 = vadd.f32 1e-05, %v748_v34  ;;  %v873_v53 = vsub.f32 %v857_v47, %v865_v40 }
 0x1d4   :  { %v782_v42 = vmul.f32 %v1043_v36, %v755_v19  ;;  %v776_v43 = vmul.f32 %v1041_v17, %v775_v35  ;;  %vm788_vm6 = vweird.f32 %v1043_v36 }
 0x1d5   :  { %1044 = vrsqrt.f32 %v756_v38  ;;  %vm789_vm8 = vmor %vm787_vm7, %vm788_vm6  ;;  %vm797_vm10 = vweird.f32 %v756_v38 }
 0x1d6   :  { %v783_v48 = vmul.f32 %v1043_v36, %v782_v42  ;;  %v780_v50 = vsel %vm779_vm5, %v1041_v17, %v776_v43 }
 0x1d7   :  { %v850_v52 = vmul.f32 %v842_v45, %v780_v50 }
 0x1d8   :  { %v784_v54 = vmul.f32 0.5, %v783_v48  ;;  %v727_v55 = vpop.xlane.xlu0 %726 }
 0x1d9   :  { %v749_v57 = vmul.f32 0.00390625, %v727_v55  ;;  %888 = vperm.xlu2 %1036, %v850_v52   ;;  %939 = vperm.xlu1 %1035, %v873_v53   ;;  %v866_v58 = vmul.f32 %v850_v52, %v1282_v56  ;;  %v845_v52 = vld [vmem:[%s1405_s3 + $0x20] sm:$0xff] }
 0x1da   :  { %v785_v59 = vsub.f32 1.5, %v784_v54 }
 0x1db   :  { %v1045_v60 = vpop.eup %1044  ;;  %v757_v62 = vadd.f32 1e-05, %v749_v57  ;;  %v874_v0 = vsub.f32 %v858_v49, %v866_v58  ;;  %v861_v57 = vld [vmem:[%s1406_s4 + $0x20] sm:$0xff] }
 0x1dc   :  { %v792_v2 = vmul.f32 %v1045_v60, %v756_v38  ;;  %v786_v3 = vmul.f32 %v1043_v36, %v785_v59  ;;  %vm798_vm9 = vweird.f32 %v1045_v60 }
 0x1dd   :  { %1046 = vrsqrt.f32 %v757_v62  ;;  %944 = vperm.xlu0 %1037, %v874_v0   ;;  %vm799_vm11 = vmor %vm797_vm10, %vm798_vm9  ;;  %vm807_vm13 = vweird.f32 %v757_v62 }
 0x1de   :  { %v793_v7 = vmul.f32 %v1045_v60, %v792_v2  ;;  %v790_v8 = vsel %vm789_vm8, %v1043_v36, %v786_v3  ;;  %v860_v36 = vld [vmem:[%s1406_s4 + $0x18] sm:$0xff] }
 0x1df   :  { %v851_v9 = vmul.f32 %v843_v5, %v790_v8 }
 0x1e0   :  { %v794_v12 = vmul.f32 0.5, %v793_v7  ;;  %v730_v56 = vpop.xlane.xlu1 %729  ;;  %v846_v7 = vld [vmem:[%s1405_s3 + $0x28] sm:$0xff] }
 0x1e1   :  { %v750_v15 = vmul.f32 0.00390625, %v730_v56  ;;  %v867_v17 = vmul.f32 %v851_v9, %v1288_v1 }
 0x1e2   :  { %v795_v19 = vsub.f32 1.5, %v794_v12 }
 0x1e3   :  { %v1047_v20 = vpop.eup %1046  ;;  %v758_v22 = vadd.f32 1e-05, %v750_v15  ;;  %v875_v24 = vsub.f32 %v859_v14, %v867_v17 }
 0x1e4   :  { %v796_v26 = vmul.f32 %v1045_v60, %v795_v19  ;;  %v802_v27 = vmul.f32 %v1047_v20, %v757_v62  ;;  %vm808_vm12 = vweird.f32 %v1047_v20  ;;  %v847_v19 = vld [vmem:[%s1405_s3 + $0x30] sm:$0xff] }
 0x1e5   :  { %1048 = vrsqrt.f32 %v758_v22  ;;  %893 = vperm.xlu0 %1037, %v851_v9   ;;  %949 = vperm.xlu2 %1036, %v875_v24   ;;  %vm809_vm14 = vmor %vm807_vm13, %vm808_vm12  ;;  %vm817_vm0 = vweird.f32 %v758_v22 }
 0x1e6   :  { %v800_v29 = vsel %vm799_vm11, %v1045_v60, %v796_v26  ;;  %v803_v33 = vmul.f32 %v1047_v20, %v802_v27 }
 0x1e7   :  { %v852_v34 = vmul.f32 %v844_v28, %v800_v29  ;;  %v863_v29 = vld [vmem:[%s1406_s4 + $0x30] sm:$0xff] }
 0x1e8   :  { %v804_v1 = vmul.f32 0.5, %v803_v33  ;;  %v733_v35 = vpop.xlane.xlu2 %732 }
 0x1e9   :  { %v751_v40 = vmul.f32 0.00390625, %v733_v35  ;;  %v868_v38 = vmul.f32 %v852_v34, %v1294_v11 }
 0x1ea   :  { %v805_v42 = vsub.f32 1.5, %v804_v1 }
 0x1eb   :  { %v1049_v43 = vpop.eup %1048  ;;  %v759_v45 = vadd.f32 1e-05, %v751_v40  ;;  %v876_v47 = vsub.f32 %v860_v36, %v868_v38  ;;  %v864_v40 = vld [vmem:[%s1406_s4 + $0x38] sm:$0xff] }
 0x1ec   :  { %v812_v48 = vmul.f32 %v1049_v43, %v758_v22  ;;  %v806_v50 = vmul.f32 %v1047_v20, %v805_v42  ;;  %vm818_vm15 = vweird.f32 %v1049_v43 }
 0x1ed   :  { %1050 = vrsqrt.f32 %v759_v45  ;;  %954 = vperm.xlu1 %1035, %v876_v47   ;;  %898 = vperm.xlu2 %1036, %v852_v34   ;;  %vm819_vm1 = vmor %vm817_vm0, %vm818_vm15  ;;  %vm827_vm3 = vweird.f32 %v759_v45  ;;  %v848_v34 = vld [vmem:[%s1405_s3 + $0x38] sm:$0xff]  ;;  %s1137_s3 = smov [#allocation8]  }
 0x1ee   :  { %v813_v53 = vmul.f32 %v1049_v43, %v812_v48  ;;  %v810_v54 = vsel %vm809_vm14, %v1047_v20, %v806_v50 }
 0x1ef   :  { %v853_v55 = vmul.f32 %v845_v52, %v810_v54 }
 0x1f0   :  { %v814_v11 = vmul.f32 0.5, %v813_v53  ;;  %v736_v49 = vpop.xlane.xlu0 %735 }
 0x1f1   :  { %v752_v58 = vmul.f32 0.00390625, %v736_v49  ;;  %v869_v59 = vmul.f32 %v853_v55, %v1300_v21 }
 0x1f2   :  { %v815_v60 = vsub.f32 1.5, %v814_v11 }
 0x1f3   :  { %v1051_v62 = vpop.eup %1050  ;;  %v760_v0 = vadd.f32 1e-05, %v752_v58  ;;  %v877_v2 = vsub.f32 %v861_v57, %v869_v59 }
 0x1f4   :  { %v822_v3 = vmul.f32 %v1051_v62, %v759_v45  ;;  %v816_v5 = vmul.f32 %v1049_v43, %v815_v60  ;;  %vm828_vm2 = vweird.f32 %v1051_v62 }
 0x1f5   :  { %1052 = vrsqrt.f32 %v760_v0  ;;  %903 = vperm.xlu1 %1035, %v853_v55   ;;  %959 = vperm.xlu0 %1037, %v877_v2   ;;  %vm829_vm4 = vmor %vm827_vm3, %vm828_vm2  ;;  %vm837_vm6 = vweird.f32 %v760_v0 }
 0x1f6   :  { %v823_v8 = vmul.f32 %v1051_v62, %v822_v3  ;;  %v820_v9 = vsel %vm819_vm1, %v1049_v43, %v816_v5  ;;  %v862_v43 = vld [vmem:[%s1406_s4 + $0x28] sm:$0xff]  ;;  %s1013_s4 = sshll.u32 %s1137_s3, 4  ;;  %s1014_s4 = int_to_ptr.vmem [resolvable:$true] %s1013_s4 }
 0x1f7   :  { %v854_v12 = vmul.f32 %v846_v7, %v820_v9 }
 0x1f8   :  { %v824_v21 = vmul.f32 0.5, %v823_v8 }
 0x1f9   :  { %908 = vperm.xlu2 %1036, %v854_v12   ;;  %v870_v42 = vmul.f32 %v854_v12, %v1306_v31 }
 0x1fa   :  { %v825_v56 = vsub.f32 1.5, %v824_v21 }
 0x1fb   :  { %v1053_v14 = vpop.eup %1052  ;;  %v878_v45 = vsub.f32 %v862_v43, %v870_v42 }
 0x1fc   :  { %v832_v15 = vmul.f32 %v1053_v14, %v760_v0  ;;  %v826_v17 = vmul.f32 %v1051_v62, %v825_v56  ;;  %vm838_vm5 = vweird.f32 %v1053_v14 }
 0x1fd   :  { %vm839_vm7 = vmor %vm837_vm6, %vm838_vm5 }
 0x1fe   :  { %v833_v20 = vmul.f32 %v1053_v14, %v832_v15  ;;  %v830_v22 = vsel %vm829_vm4, %v1051_v62, %v826_v17 }
 0x1ff   :  { %v855_v24 = vmul.f32 %v847_v19, %v830_v22 }
 0x200   :  { %v834_v26 = vmul.f32 0.5, %v833_v20 }
 0x201   :  { %913 = vperm.xlu1 %1035, %v855_v24   ;;  %v871_v28 = vmul.f32 %v855_v24, %v1312_v41 }
 0x202   :  { %v835_v27 = vsub.f32 1.5, %v834_v26 }
 0x203   :  { %v879_v35 = vsub.f32 %v863_v29, %v871_v28 }
 0x204   :  { %v836_v33 = vmul.f32 %v1053_v14, %v835_v27 }
 0x206   :  { %v840_v1 = vsel %vm839_vm7, %v1053_v14, %v836_v33 }
 0x207   :  { %v856_v36 = vmul.f32 %v848_v34, %v840_v1 }
 0x209   :  { %969 = vperm.xlu1 %1035, %v879_v35   ;;  %918 = vperm.xlu2 %1036, %v856_v36   ;;  %v872_v41 = vmul.f32 %v856_v36, %v1318_v51 }
 0x20b   :  { %v880_v38 = vsub.f32 %v864_v40, %v872_v41 }
 0x20d   :  { %974 = vperm.xlu0 %1037, %v880_v38  }
 0x211   :  { %964 = vperm.xlu2 %1036, %v878_v45  }
 0x233   :  { %v889_v47 = vpop.permute.xlu2 %888 }
 0x234   :  { %v923_v11 = vmul.f32 %v889_v47, %v1234_v4  ;;  %v924_v31 = vmul.f32 %v889_v47, %v1236_v6 }
 0x23f   :  { %v950_v50 = vpop.permute.xlu2 %949 }
 0x243   :  { %v884_v48 = vpop.permute.xlu1 %883 }
 0x244   :  { %v921_v52 = vmul.f32 %v884_v48, %v1228_v61  ;;  %v922_v53 = vmul.f32 %v884_v48, %v1230_v63 }
 0x247   :  { %v899_v59 = vpop.permute.xlu2 %898 }
 0x248   :  { %v927_v4 = vmul.f32 %v899_v59, %v1246_v16  ;;  %v928_v6 = vmul.f32 %v899_v59, %v1248_v18 }
 0x24b   :  { %v940_v54 = vpop.permute.xlu1 %939 }
 0x24c   :  { %v977_v55 = vadd.f32 %v940_v54, %v921_v52  ;;  %v978_v51 = vadd.f32 %v940_v54, %v922_v53 }
 0x24e   :  { %993 = vst [vmem:[#allocation8] sm:$0xff] %v977_v55 }
 0x24f   :  { %994 = vst [vmem:[#allocation8 + $0x8] sm:$0xff] %v978_v51  ;;  %v945_v49 = vpop.permute.xlu0 %944 }
 0x250   :  { %v979_v57 = vadd.f32 %v945_v49, %v923_v11  ;;  %v980_v58 = vadd.f32 %v945_v49, %v924_v31 }
 0x252   :  { %995 = vst [vmem:[#allocation8 + $0x10] sm:$0xff] %v979_v57 }
 0x253   :  { %996 = vst [vmem:[#allocation8 + $0x18] sm:$0xff] %v980_v58  ;;  %v909_v2 = vpop.permute.xlu2 %908 }
 0x254   :  { %v931_v21 = vmul.f32 %v909_v2, %v1258_v30  ;;  %v932_v56 = vmul.f32 %v909_v2, %v1260_v32 }
 0x257   :  { %v894_v60 = vpop.permute.xlu0 %893 }
 0x258   :  { %v925_v61 = vmul.f32 %v894_v60, %v1240_v10  ;;  %v926_v63 = vmul.f32 %v894_v60, %v1242_v13 }
 0x25a   :  { %v981_v62 = vadd.f32 %v950_v50, %v925_v61  ;;  %v982_v0 = vadd.f32 %v950_v50, %v926_v63 }
 0x25c   :  { %997 = vst [vmem:[#allocation8 + $0x20] sm:$0xff] %v981_v62 }
 0x25d   :  { %998 = vst [vmem:[#allocation8 + $0x28] sm:$0xff] %v982_v0 }
 0x25f   :  { %v955_v3 = vpop.permute.xlu1 %954 }
 0x260   :  { %v983_v5 = vadd.f32 %v955_v3, %v927_v4  ;;  %v984_v7 = vadd.f32 %v955_v3, %v928_v6 }
 0x262   :  { %999 = vst [vmem:[#allocation8 + $0x30] sm:$0xff] %v983_v5 }
 0x263   :  { %1000 = vst [vmem:[#allocation8 + $0x38] sm:$0xff] %v984_v7  ;;  %v919_v8 = vpop.permute.xlu2 %918 }
 0x264   :  { %v935_v30 = vmul.f32 %v919_v8, %v1270_v44  ;;  %v936_v32 = vmul.f32 %v919_v8, %v1272_v46 }
 0x267   :  { %v904_v9 = vpop.permute.xlu1 %903  ;;  %v960_v12 = vpop.permute.xlu0 %959 }
 0x268   :  { %v929_v10 = vmul.f32 %v904_v9, %v1252_v23  ;;  %v930_v13 = vmul.f32 %v904_v9, %v1254_v25 }
 0x26a   :  { %v985_v14 = vadd.f32 %v960_v12, %v929_v10  ;;  %v986_v16 = vadd.f32 %v960_v12, %v930_v13 }
 0x26b   :  { %v965_v15 = vpop.permute.xlu2 %964 }
 0x26c   :  { %1001 = vst [vmem:[#allocation8 + $0x40] sm:$0xff] %v985_v14  ;;  %v987_v18 = vadd.f32 %v965_v15, %v931_v21  ;;  %v988_v17 = vadd.f32 %v965_v15, %v932_v56 }
 0x26d   :  { %1002 = vst [vmem:[#allocation8 + $0x48] sm:$0xff] %v986_v16 }
 0x26e   :  { %1003 = vst [vmem:[#allocation8 + $0x50] sm:$0xff] %v987_v18 }
 0x26f   :  { %1004 = vst [vmem:[#allocation8 + $0x58] sm:$0xff] %v988_v17 }
 0x273   :  { %v914_v19 = vpop.permute.xlu1 %913 }
 0x274   :  { %v933_v20 = vmul.f32 %v914_v19, %v1264_v37  ;;  %v934_v23 = vmul.f32 %v914_v19, %v1266_v39 }
 0x27b   :  { %v970_v25 = vpop.permute.xlu1 %969 }
 0x27c   :  { %v989_v22 = vadd.f32 %v970_v25, %v933_v20  ;;  %v990_v24 = vadd.f32 %v970_v25, %v934_v23 }
 0x27e   :  { %1005 = vst [vmem:[#allocation8 + $0x60] sm:$0xff] %v989_v22 }
 0x27f   :  { %1006 = vst [vmem:[#allocation8 + $0x68] sm:$0xff] %v990_v24  ;;  %v975_v26 = vpop.permute.xlu0 %974 }
 0x280   :  { %v991_v27 = vadd.f32 %v975_v26, %v935_v30  ;;  %v992_v37 = vadd.f32 %v975_v26, %v936_v32 }
 0x282   :  { %1007 = vst [vmem:[#allocation8 + $0x70] sm:$0xff] %v991_v27 }
 0x283   :  { %1008 = vst [vmem:[#allocation8 + $0x78] sm:$0xff] %v992_v37 }
 0x284   :  { %1021 = dma.vmem_to_hbm [thread:$0]  %s1014_s4, 2048, %s1016_s17, [#allocation5], %s1133_s26, %s1133_s26, %s1134_s27  }
 0x285   :  { %1130 = dma.done.wait [#allocation5], 2048  }
 0x286   :  { %1131 = vsyncadd [#allocation5], 4294965248 }
 0x287   :  { %1026 = vsyncpa [#allocation4], 1 }
 0x288   :  { %1027 = vsyncpa [#allocation7], 1 }
 0x289   :  { %1028 = vsyncpa [#allocation5], 1 }

</bundles_post_ra>
